<compile_context>
chip_gen: v5e
topology: v5e:2x2
jax: 0.10.0
libtpu: 0.0.40
codegen_flags: <defaults>
</compile_context>

<pallas_src>
import functools

import jax
import jax.numpy as jnp
from jax import lax
from jax.experimental import pallas as pl
from jax.experimental.pallas import tpu as pltpu

LN_EPS = 1e-5
_MiB = 1024 * 1024


def _round_up(a, b):
    return ((a + b - 1) // b) * b


def _tpu_vmem_and_multicore():
    """Returns (per-core VMEM capacity bytes, True if >1 TensorCore per chip)."""
    cap = 128 * _MiB
    multi = False
    try:
        info = pltpu.get_tpu_info()
        cap = int(getattr(info, "vmem_capacity_bytes", cap))
        cores = getattr(info, "num_tensorcores", None) or getattr(info, "tensorcore_count", None)
        if cores is not None:
            multi = int(cores) > 1
        else:
            # v7x reports 64 MiB per TensorCore (2 TCs/chip); v5e/v6e: 128 MiB, 1 TC.
            multi = cap <= 100 * _MiB
    except Exception:
        pass
    return cap, multi


def _fused_vmem_bytes(D, br, in_isz, out_isz):
    lane_d = max(D, 128)
    resident = 2 * D * lane_d * 2 + 8 * lane_d * 4      # bf16 weights + packed vecs (single-buffered)
    io = 2 * br * lane_d * (in_isz + out_isz)            # in/out row tiles, double-buffered
    body = 6 * br * lane_d * 4                           # f32/bf16 intermediates in the body
    return resident + io + body + 2 * _MiB               # compiler-internal scratch margin


def _tiled_vmem_bytes(D, br, tk, in_isz, out_isz):
    lane_d = max(D, 128)
    lane_k = max(tk, 128)
    w = 2 * lane_k * lane_d * 2                          # bf16 weight K-slice, double-buffered
    xin = 2 * br * lane_k * in_isz
    res = 2 * br * lane_d * in_isz
    out = 2 * br * lane_d * out_isz
    acc = br * lane_d * 4
    vec = 8 * lane_d * 4
    return w + xin + res + out + acc + vec + 2 * _MiB


def _ln_relu(h, g, b):
    mu = jnp.mean(h, axis=-1, keepdims=True)
    d = h - mu                                           # bound once, reused for var + normalize
    var = jnp.mean(d * d, axis=-1, keepdims=True)
    return jnp.maximum(d * lax.rsqrt(var + LN_EPS) * g + b, 0.0)


# --------------------------------------------------------------------------- #
# Fused path: both (D, D) bf16 weights resident in VMEM, grid tiles rows only.
# --------------------------------------------------------------------------- #
def _res_fused_kernel(x_ref, w1_ref, w2_ref, vec_ref, o_ref, *, n_sub):
    # vec rows: 0=b1, 1=g1, 2=be1, 3=b2, 4=g2, 5=be2 (rows 6,7 padding).
    b1, g1, be1 = vec_ref[0:1, :], vec_ref[1:2, :], vec_ref[2:3, :]
    b2, g2, be2 = vec_ref[3:4, :], vec_ref[4:5, :], vec_ref[5:6, :]
    w1 = w1_ref[...]
    w2 = w2_ref[...]
    br = o_ref.shape[0]
    sub = br // n_sub
    # Independent sub-tiles in straight-line code: the LLO scheduler can overlap
    # one sub-tile's matmuls (MXU) with another's LayerNorm/ReLU (VALU/XLU/EUP).
    for st in range(n_sub):
        rs = slice(st * sub, (st + 1) * sub)
        h = jnp.dot(x_ref[rs, :].astype(jnp.bfloat16), w1,
                    preferred_element_type=jnp.float32) + b1
        h = _ln_relu(h, g1, be1)
        h = jnp.dot(h.astype(jnp.bfloat16), w2,
                    preferred_element_type=jnp.float32) + b2
        h = _ln_relu(h, g2, be2)
        # Residual re-reads x_ref here -> no f32 input copy live across both matmuls.
        o_ref[rs, :] = (h + x_ref[rs, :].astype(jnp.float32)).astype(o_ref.dtype)


# --------------------------------------------------------------------------- #
# Tiled fallback: one Linear+LN+ReLU stage per pallas_call, K streamed on an
# "arbitrary" grid axis into an f32 VMEM accumulator.  Stage 2 adds the residual.
# --------------------------------------------------------------------------- #
def _stage_kernel(x_ref, w_ref, vec_ref, o_ref, acc_ref):
    k = pl.program_id(1)

    @pl.when(k == 0)
    def _():
        acc_ref[...] = jnp.zeros_like(acc_ref)

    acc_ref[...] += jnp.dot(x_ref[...].astype(jnp.bfloat16), w_ref[...],
                            preferred_element_type=jnp.float32)

    @pl.when(k == pl.num_programs(1) - 1)
    def _():
        b, g, be = vec_ref[0:1, :], vec_ref[1:2, :], vec_ref[2:3, :]
        o_ref[...] = _ln_relu(acc_ref[...] + b, g, be).astype(o_ref.dtype)


def _stage_res_kernel(x_ref, w_ref, vec_ref, res_ref, o_ref, acc_ref):
    k = pl.program_id(1)

    @pl.when(k == 0)
    def _():
        acc_ref[...] = jnp.zeros_like(acc_ref)

    acc_ref[...] += jnp.dot(x_ref[...].astype(jnp.bfloat16), w_ref[...],
                            preferred_element_type=jnp.float32)

    @pl.when(k == pl.num_programs(1) - 1)
    def _():
        b, g, be = vec_ref[0:1, :], vec_ref[1:2, :], vec_ref[2:3, :]
        h = _ln_relu(acc_ref[...] + b, g, be)
        o_ref[...] = (h + res_ref[...].astype(jnp.float32)).astype(o_ref.dtype)


def _run_stage(x_in, w, vec8, residual, *, br, tk, out_dtype, vmem_limit):
    N, K = x_in.shape
    D = w.shape[1]
    grid = (N // br, K // tk)
    x_spec = pl.BlockSpec((br, tk), lambda i, k: (i, k))
    w_spec = pl.BlockSpec((tk, D), lambda i, k: (k, 0))
    vec_spec = pl.BlockSpec(memory_space=pltpu.MemorySpace.VMEM)
    out_spec = pl.BlockSpec((br, D), lambda i, k: (i, 0))
    in_specs = [x_spec, w_spec, vec_spec]
    args = [x_in, w, vec8]
    kernel = _stage_kernel
    if residual is not None:
        in_specs.append(pl.BlockSpec((br, D), lambda i, k: (i, 0)))
        args.append(residual)
        kernel = _stage_res_kernel
    cost = pl.CostEstimate(
        flops=int(2 * N * K * D + 10 * N * D),
        transcendentals=int(N),
        bytes_accessed=int(N * K * x_in.dtype.itemsize + K * D * 2 +
                           N * D * jnp.dtype(out_dtype).itemsize),
    )
    return pl.pallas_call(
        kernel,
        out_shape=jax.ShapeDtypeStruct((N, D), out_dtype),
        grid_spec=pltpu.PrefetchScalarGridSpec(
            num_scalar_prefetch=0,
            grid=grid,
            in_specs=in_specs,
            out_specs=out_spec,
            scratch_shapes=[pltpu.VMEM((br, D), jnp.float32)],
        ),
        compiler_params=pltpu.CompilerParams(
            dimension_semantics=("parallel", "arbitrary"),
            vmem_limit_bytes=int(vmem_limit)),
        cost_estimate=cost,
    )(*args)


@functools.partial(jax.jit, static_argnames=("block_rows", "io_dtype", "force_tiled"))
def res_layer(x, params, block_rows=None, io_dtype=None, force_tiled=False):
    """x: (..., D). params: w1/w2 in (D_in, D_out) bf16, b*/g*/be* as (D,) f32."""
    orig_shape = x.shape
    D = orig_shape[-1]
    x2 = x.reshape(-1, D)
    if io_dtype is not None:
        # Optional bf16-I/O mode for BW-starved parts (v5e): halves stream bytes.
        # LN / accumulation / residual math stays f32 inside the kernels.
        x2 = x2.astype(io_dtype)
    out_dtype = x2.dtype
    N = x2.shape[0]
    in_isz = x2.dtype.itemsize
    out_isz = jnp.dtype(out_dtype).itemsize

    vmem_cap, multi_tc = _tpu_vmem_and_multicore()
    usable = vmem_cap - 8 * _MiB        # headroom for compiler-internal scratch

    # ---- row-tile selection --------------------------------------------------
    n_pad8 = _round_up(N, 8)
    if block_rows is None:
        # 512-row tiles on 128-MiB parts (v5e/v6e); 256 where VMEM is 64 MiB (v7x).
        block_rows = 512 if vmem_cap >= 100 * _MiB else 256
    br = max(8, (min(block_rows, n_pad8) // 8) * 8)
    # Only split a single big tile when there are 2 TensorCores to feed (v7x);
    # on single-TC parts the grid is a sequential loop and splitting just adds
    # per-step overhead.
    if multi_tc and n_pad8 >= 16 and (n_pad8 // br) < 2:
        br = max(8, (_round_up(pl.cdiv(n_pad8, 2), 8) // 8) * 8)
    # Shrink the row tile until the resident-weight fused path fits the budget.
    while br > 8 and _fused_vmem_bytes(D, br, in_isz, out_isz) > usable:
        br = max(8, ((br // 2) // 8) * 8)

    use_fused = (not force_tiled) and (_fused_vmem_bytes(D, br, in_isz, out_isz) <= usable)

    # ---- parameters ----------------------------------------------------------
    w1 = params["w1"].astype(jnp.bfloat16)
    w2 = params["w2"].astype(jnp.bfloat16)
    zeros = jnp.zeros((D,), jnp.float32)

    if use_fused:
        n_pad = _round_up(N, br)
        x2p = jnp.pad(x2, ((0, n_pad - N), (0, 0))) if n_pad != N else x2
        vec = jnp.stack([params["b1"], params["g1"], params["be1"],
                         params["b2"], params["g2"], params["be2"],
                         zeros, zeros], axis=0).astype(jnp.float32)        # (8, D)

        n_sub = 4 if (br >= 128 and br % 32 == 0) else (2 if (br >= 16 and br % 16 == 0) else 1)

        row_spec = pl.BlockSpec((br, D), lambda i: (i, 0))
        resident = pl.BlockSpec(memory_space=pltpu.MemorySpace.VMEM)       # single-buffered

        vmem_limit = int(min(usable,
                             max(32 * _MiB, _fused_vmem_bytes(D, br, in_isz, out_isz))))
        cost = pl.CostEstimate(
            flops=int(4 * n_pad * D * D + 14 * n_pad * D),
            transcendentals=int(2 * n_pad),
            bytes_accessed=int(n_pad * D * (in_isz + out_isz) + 2 * D * D * 2 + 8 * D * 4),
        )
        out = pl.pallas_call(
            functools.partial(_res_fused_kernel, n_sub=n_sub),
            out_shape=jax.ShapeDtypeStruct((n_pad, D), out_dtype),
            grid_spec=pltpu.PrefetchScalarGridSpec(
                num_scalar_prefetch=0,
                grid=(n_pad // br,),
                in_specs=[row_spec, resident, resident, resident],
                out_specs=row_spec,
            ),
            compiler_params=pltpu.CompilerParams(
                dimension_semantics=("parallel",),
                vmem_limit_bytes=vmem_limit),
            cost_estimate=cost,
        )(x2p, w1, w2, vec)
    else:
        # K-tiled weight fallback (weights too big to keep resident).
        tk = D
        for cand in (512, 256, 128):
            if D % cand == 0:
                tk = cand
                break
        br_t = max(8, (min(256, n_pad8) // 8) * 8)
        while br_t > 8 and _tiled_vmem_bytes(D, br_t, tk, in_isz, out_isz) > usable:
            br_t = max(8, ((br_t // 2) // 8) * 8)
        n_pad = _round_up(N, br_t)
        x2p = jnp.pad(x2, ((0, n_pad - N), (0, 0))) if n_pad != N else x2
        vec1 = jnp.stack([params["b1"], params["g1"], params["be1"],
                          zeros, zeros, zeros, zeros, zeros], axis=0).astype(jnp.float32)
        vec2 = jnp.stack([params["b2"], params["g2"], params["be2"],
                          zeros, zeros, zeros, zeros, zeros], axis=0).astype(jnp.float32)
        vmem_limit = int(min(usable,
                             max(32 * _MiB, _tiled_vmem_bytes(D, br_t, tk, in_isz, out_isz))))
        h = _run_stage(x2p, w1, vec1, None, br=br_t, tk=tk,
                       out_dtype=jnp.bfloat16, vmem_limit=vmem_limit)
        out = _run_stage(h, w2, vec2, x2p, br=br_t, tk=tk,
                         out_dtype=out_dtype, vmem_limit=vmem_limit)

    if n_pad != N:
        out = out[:N]
    return out.reshape(orig_shape)


def init_params(key, in_dim, out_dim):
    """Deterministic init mirroring the PyTorch module's parameter shapes."""
    assert in_dim == out_dim, "residual add requires in_dim == out_dim"
    k1, k2, k3, k4 = jax.random.split(key, 4)
    # nn.Linear weight shape is (out, in); we store the transpose (in, out).
    bound1 = 1.0 / jnp.sqrt(in_dim)
    w1_pt = jax.random.uniform(k1, (out_dim, in_dim), jnp.float32, -bound1, bound1)
    b1 = jax.random.uniform(k2, (out_dim,), jnp.float32, -bound1, bound1)
    bound2 = 1.0 / jnp.sqrt(out_dim)
    w2_pt = jax.random.uniform(k3, (out_dim, out_dim), jnp.float32, -bound2, bound2)
    b2 = jax.random.uniform(k4, (out_dim,), jnp.float32, -bound2, bound2)
    return {
        "w1": w1_pt.T.astype(jnp.bfloat16), "b1": b1,
        "g1": jnp.ones((out_dim,), jnp.float32),    # LayerNorm weight init = 1
        "be1": jnp.zeros((out_dim,), jnp.float32),  # LayerNorm bias init = 0
        "w2": w2_pt.T.astype(jnp.bfloat16), "b2": b2,
        "g2": jnp.ones((out_dim,), jnp.float32),
        "be2": jnp.zeros((out_dim,), jnp.float32),
    }


def _reference(x, p):
    """Pure-JAX reference mirroring the PyTorch forward (bf16 matmul operands,
    f32 accumulation / LayerNorm, same as the kernel)."""
    def ln(h, g, b):
        mu = jnp.mean(h, axis=-1, keepdims=True)
        var = jnp.mean(jnp.square(h - mu), axis=-1, keepdims=True)
        return (h - mu) * lax.rsqrt(var + LN_EPS) * g + b

    h = jnp.dot(x.astype(jnp.bfloat16), p["w1"].astype(jnp.bfloat16),
                preferred_element_type=jnp.float32) + p["b1"]
    h = jnp.maximum(ln(h, p["g1"], p["be1"]), 0.0)
    h = jnp.dot(h.astype(jnp.bfloat16), p["w2"].astype(jnp.bfloat16),
                preferred_element_type=jnp.float32) + p["b2"]
    h = jnp.maximum(ln(h, p["g2"], p["be2"]), 0.0)
    return h + x


if __name__ == "__main__":
    key = jax.random.PRNGKey(0)
    kx, kp = jax.random.split(key)

    batch, seq, hidden = 2, 8, 32       # N = 16 rows, D = 32 features
    x = jax.random.normal(kx, (batch, seq, hidden), jnp.float32)
    params = init_params(kp, hidden, hidden)

    ref = _reference(x.reshape(-1, hidden), params).reshape(x.shape)

    # Fused resident-weight path.
    out = jax.block_until_ready(res_layer(x, params))
    assert jnp.allclose(out, ref, atol=2e-3, rtol=2e-3), "fused path mismatch vs reference"

    # Exercise the K-tiled fallback path as well (used on v7x for large D).
    out_tiled = jax.block_until_ready(res_layer(x, params, force_tiled=True))
    assert jnp.allclose(out_tiled, ref, atol=2e-3, rtol=2e-3), "tiled path mismatch vs reference"

    print("KERNEL_OK")
</pallas_src>

<mosaic_0001>
module attributes {stable_mosaic.version = 11 : i64} {
  func.func @_res_fused_kernel(%arg0: i32, %arg1: memref<16x32xf32, #tpu.memory_space<vmem>>, %arg2: memref<32x32xbf16, #tpu.memory_space<vmem>>, %arg3: memref<32x32xbf16, #tpu.memory_space<vmem>>, %arg4: memref<8x32xf32, #tpu.memory_space<vmem>>, %arg5: memref<16x32xf32, #tpu.memory_space<vmem>>) attributes {dimension_semantics = [#tpu.dimension_semantics<parallel>], iteration_bounds = array<i64: 1>, scalar_prefetch = 0 : i64, scratch_operands = 0 : i64, tpu.core_type = #tpu.core_type<tc>, window_params = [{transform_indices = @transform_0, window_bounds = array<i64: 16, 32>}, {pipeline_mode = #tpu.pipeline_mode<synchronous>, transform_indices = @transform_1, window_bounds = array<i64: 32, 32>}, {pipeline_mode = #tpu.pipeline_mode<synchronous>, transform_indices = @transform_2, window_bounds = array<i64: 32, 32>}, {pipeline_mode = #tpu.pipeline_mode<synchronous>, transform_indices = @transform_3, window_bounds = array<i64: 8, 32>}, {transform_indices = @transform_4, window_bounds = array<i64: 16, 32>}]} {
    %c0 = arith.constant 0 : index
    %c0_0 = arith.constant 0 : index
    %0 = vector.load %arg4[%c0, %c0_0] : memref<8x32xf32, #tpu.memory_space<vmem>>, vector<1x32xf32>
    %c1 = arith.constant 1 : index
    %c0_1 = arith.constant 0 : index
    %1 = vector.load %arg4[%c1, %c0_1] : memref<8x32xf32, #tpu.memory_space<vmem>>, vector<1x32xf32>
    %c2 = arith.constant 2 : index
    %c0_2 = arith.constant 0 : index
    %2 = vector.load %arg4[%c2, %c0_2] : memref<8x32xf32, #tpu.memory_space<vmem>>, vector<1x32xf32>
    %c3 = arith.constant 3 : index
    %c0_3 = arith.constant 0 : index
    %3 = vector.load %arg4[%c3, %c0_3] : memref<8x32xf32, #tpu.memory_space<vmem>>, vector<1x32xf32>
    %c4 = arith.constant 4 : index
    %c0_4 = arith.constant 0 : index
    %4 = vector.load %arg4[%c4, %c0_4] : memref<8x32xf32, #tpu.memory_space<vmem>>, vector<1x32xf32>
    %c5 = arith.constant 5 : index
    %c0_5 = arith.constant 0 : index
    %5 = vector.load %arg4[%c5, %c0_5] : memref<8x32xf32, #tpu.memory_space<vmem>>, vector<1x32xf32>
    %c0_6 = arith.constant 0 : index
    %c0_7 = arith.constant 0 : index
    %6 = vector.load %arg2[%c0_6, %c0_7] : memref<32x32xbf16, #tpu.memory_space<vmem>>, vector<32x32xbf16>
    %c0_8 = arith.constant 0 : index
    %c0_9 = arith.constant 0 : index
    %7 = vector.load %arg3[%c0_8, %c0_9] : memref<32x32xbf16, #tpu.memory_space<vmem>>, vector<32x32xbf16>
    %c0_10 = arith.constant 0 : index
    %c0_11 = arith.constant 0 : index
    %8 = vector.load %arg1[%c0_10, %c0_11] : memref<16x32xf32, #tpu.memory_space<vmem>>, vector<8x32xf32>
    %9 = arith.truncf %8 : vector<8x32xf32> to vector<8x32xbf16>
    %cst = arith.constant dense<0.000000e+00> : vector<8x32xf32>
    %10 = tpu.matmul %9, %6, %cst {dimension_numbers = #tpu.dot_dimension_numbers<[1], [0], [0], [1], [0, 0, 1, 1], [], []>} : vector<8x32xbf16>, vector<32x32xbf16>, vector<8x32xf32> -> vector<8x32xf32>
    %11 = vector.broadcast %0 : vector<1x32xf32> to vector<8x32xf32>
    %12 = arith.addf %10, %11 : vector<8x32xf32>
    %cst_12 = arith.constant dense<0.000000e+00> : vector<8xf32>
    %13 = vector.multi_reduction <add>, %12, %cst_12 [1] : vector<8x32xf32> to vector<8xf32>
    %14 = vector.shape_cast %13 : vector<8xf32> to vector<8x1xf32>
    %cst_13 = arith.constant 3.200000e+01 : f32
    %15 = vector.broadcast %cst_13 : f32 to vector<8x1xf32>
    %16 = arith.divf %14, %15 : vector<8x1xf32>
    %17 = vector.broadcast %16 : vector<8x1xf32> to vector<8x32xf32>
    %18 = arith.subf %12, %17 : vector<8x32xf32>
    %19 = arith.mulf %18, %18 : vector<8x32xf32>
    %cst_14 = arith.constant dense<0.000000e+00> : vector<8xf32>
    %20 = vector.multi_reduction <add>, %19, %cst_14 [1] : vector<8x32xf32> to vector<8xf32>
    %21 = vector.shape_cast %20 : vector<8xf32> to vector<8x1xf32>
    %cst_15 = arith.constant 3.200000e+01 : f32
    %22 = vector.broadcast %cst_15 : f32 to vector<8x1xf32>
    %23 = arith.divf %21, %22 : vector<8x1xf32>
    %cst_16 = arith.constant 9.99999974E-6 : f32
    %24 = vector.broadcast %cst_16 : f32 to vector<8x1xf32>
    %25 = arith.addf %23, %24 : vector<8x1xf32>
    %26 = math.rsqrt %25 : vector<8x1xf32>
    %27 = vector.broadcast %26 : vector<8x1xf32> to vector<8x32xf32>
    %28 = arith.mulf %18, %27 : vector<8x32xf32>
    %29 = vector.broadcast %1 : vector<1x32xf32> to vector<8x32xf32>
    %30 = arith.mulf %28, %29 : vector<8x32xf32>
    %31 = vector.broadcast %2 : vector<1x32xf32> to vector<8x32xf32>
    %32 = arith.addf %30, %31 : vector<8x32xf32>
    %cst_17 = arith.constant 0.000000e+00 : f32
    %33 = vector.broadcast %cst_17 : f32 to vector<8x32xf32>
    %34 = arith.maximumf %32, %33 : vector<8x32xf32>
    %35 = arith.truncf %34 : vector<8x32xf32> to vector<8x32xbf16>
    %cst_18 = arith.constant dense<0.000000e+00> : vector<8x32xf32>
    %36 = tpu.matmul %35, %7, %cst_18 {dimension_numbers = #tpu.dot_dimension_numbers<[1], [0], [0], [1], [0, 0, 1, 1], [], []>} : vector<8x32xbf16>, vector<32x32xbf16>, vector<8x32xf32> -> vector<8x32xf32>
    %37 = vector.broadcast %3 : vector<1x32xf32> to vector<8x32xf32>
    %38 = arith.addf %36, %37 : vector<8x32xf32>
    %cst_19 = arith.constant dense<0.000000e+00> : vector<8xf32>
    %39 = vector.multi_reduction <add>, %38, %cst_19 [1] : vector<8x32xf32> to vector<8xf32>
    %40 = vector.shape_cast %39 : vector<8xf32> to vector<8x1xf32>
    %cst_20 = arith.constant 3.200000e+01 : f32
    %41 = vector.broadcast %cst_20 : f32 to vector<8x1xf32>
    %42 = arith.divf %40, %41 : vector<8x1xf32>
    %43 = vector.broadcast %42 : vector<8x1xf32> to vector<8x32xf32>
    %44 = arith.subf %38, %43 : vector<8x32xf32>
    %45 = arith.mulf %44, %44 : vector<8x32xf32>
    %cst_21 = arith.constant dense<0.000000e+00> : vector<8xf32>
    %46 = vector.multi_reduction <add>, %45, %cst_21 [1] : vector<8x32xf32> to vector<8xf32>
    %47 = vector.shape_cast %46 : vector<8xf32> to vector<8x1xf32>
    %cst_22 = arith.constant 3.200000e+01 : f32
    %48 = vector.broadcast %cst_22 : f32 to vector<8x1xf32>
    %49 = arith.divf %47, %48 : vector<8x1xf32>
    %cst_23 = arith.constant 9.99999974E-6 : f32
    %50 = vector.broadcast %cst_23 : f32 to vector<8x1xf32>
    %51 = arith.addf %49, %50 : vector<8x1xf32>
    %52 = math.rsqrt %51 : vector<8x1xf32>
    %53 = vector.broadcast %52 : vector<8x1xf32> to vector<8x32xf32>
    %54 = arith.mulf %44, %53 : vector<8x32xf32>
    %55 = vector.broadcast %4 : vector<1x32xf32> to vector<8x32xf32>
    %56 = arith.mulf %54, %55 : vector<8x32xf32>
    %57 = vector.broadcast %5 : vector<1x32xf32> to vector<8x32xf32>
    %58 = arith.addf %56, %57 : vector<8x32xf32>
    %cst_24 = arith.constant 0.000000e+00 : f32
    %59 = vector.broadcast %cst_24 : f32 to vector<8x32xf32>
    %60 = arith.maximumf %58, %59 : vector<8x32xf32>
    %c0_25 = arith.constant 0 : index
    %c0_26 = arith.constant 0 : index
    %61 = vector.load %arg1[%c0_25, %c0_26] : memref<16x32xf32, #tpu.memory_space<vmem>>, vector<8x32xf32>
    %62 = arith.addf %60, %61 : vector<8x32xf32>
    %c0_27 = arith.constant 0 : index
    %c0_28 = arith.constant 0 : index
    %63 = vector.load %arg5[%c0_27, %c0_28] : memref<16x32xf32, #tpu.memory_space<vmem>>, vector<8x32xf32>
    tpu.vector_store %arg5[%c0_27, %c0_28], %62 {strides = array<i32>} : memref<16x32xf32, #tpu.memory_space<vmem>>, vector<8x32xf32>,
    %c8 = arith.constant 8 : index
    %c0_29 = arith.constant 0 : index
    %64 = vector.load %arg1[%c8, %c0_29] : memref<16x32xf32, #tpu.memory_space<vmem>>, vector<8x32xf32>
    %65 = arith.truncf %64 : vector<8x32xf32> to vector<8x32xbf16>
    %cst_30 = arith.constant dense<0.000000e+00> : vector<8x32xf32>
    %66 = tpu.matmul %65, %6, %cst_30 {dimension_numbers = #tpu.dot_dimension_numbers<[1], [0], [0], [1], [0, 0, 1, 1], [], []>} : vector<8x32xbf16>, vector<32x32xbf16>, vector<8x32xf32> -> vector<8x32xf32>
    %67 = vector.broadcast %0 : vector<1x32xf32> to vector<8x32xf32>
    %68 = arith.addf %66, %67 : vector<8x32xf32>
    %cst_31 = arith.constant dense<0.000000e+00> : vector<8xf32>
    %69 = vector.multi_reduction <add>, %68, %cst_31 [1] : vector<8x32xf32> to vector<8xf32>
    %70 = vector.shape_cast %69 : vector<8xf32> to vector<8x1xf32>
    %cst_32 = arith.constant 3.200000e+01 : f32
    %71 = vector.broadcast %cst_32 : f32 to vector<8x1xf32>
    %72 = arith.divf %70, %71 : vector<8x1xf32>
    %73 = vector.broadcast %72 : vector<8x1xf32> to vector<8x32xf32>
    %74 = arith.subf %68, %73 : vector<8x32xf32>
    %75 = arith.mulf %74, %74 : vector<8x32xf32>
    %cst_33 = arith.constant dense<0.000000e+00> : vector<8xf32>
    %76 = vector.multi_reduction <add>, %75, %cst_33 [1] : vector<8x32xf32> to vector<8xf32>
    %77 = vector.shape_cast %76 : vector<8xf32> to vector<8x1xf32>
    %cst_34 = arith.constant 3.200000e+01 : f32
    %78 = vector.broadcast %cst_34 : f32 to vector<8x1xf32>
    %79 = arith.divf %77, %78 : vector<8x1xf32>
    %cst_35 = arith.constant 9.99999974E-6 : f32
    %80 = vector.broadcast %cst_35 : f32 to vector<8x1xf32>
    %81 = arith.addf %79, %80 : vector<8x1xf32>
    %82 = math.rsqrt %81 : vector<8x1xf32>
    %83 = vector.broadcast %82 : vector<8x1xf32> to vector<8x32xf32>
    %84 = arith.mulf %74, %83 : vector<8x32xf32>
    %85 = vector.broadcast %1 : vector<1x32xf32> to vector<8x32xf32>
    %86 = arith.mulf %84, %85 : vector<8x32xf32>
    %87 = vector.broadcast %2 : vector<1x32xf32> to vector<8x32xf32>
    %88 = arith.addf %86, %87 : vector<8x32xf32>
    %cst_36 = arith.constant 0.000000e+00 : f32
    %89 = vector.broadcast %cst_36 : f32 to vector<8x32xf32>
    %90 = arith.maximumf %88, %89 : vector<8x32xf32>
    %91 = arith.truncf %90 : vector<8x32xf32> to vector<8x32xbf16>
    %cst_37 = arith.constant dense<0.000000e+00> : vector<8x32xf32>
    %92 = tpu.matmul %91, %7, %cst_37 {dimension_numbers = #tpu.dot_dimension_numbers<[1], [0], [0], [1], [0, 0, 1, 1], [], []>} : vector<8x32xbf16>, vector<32x32xbf16>, vector<8x32xf32> -> vector<8x32xf32>
    %93 = vector.broadcast %3 : vector<1x32xf32> to vector<8x32xf32>
    %94 = arith.addf %92, %93 : vector<8x32xf32>
    %cst_38 = arith.constant dense<0.000000e+00> : vector<8xf32>
    %95 = vector.multi_reduction <add>, %94, %cst_38 [1] : vector<8x32xf32> to vector<8xf32>
    %96 = vector.shape_cast %95 : vector<8xf32> to vector<8x1xf32>
    %cst_39 = arith.constant 3.200000e+01 : f32
    %97 = vector.broadcast %cst_39 : f32 to vector<8x1xf32>
    %98 = arith.divf %96, %97 : vector<8x1xf32>
    %99 = vector.broadcast %98 : vector<8x1xf32> to vector<8x32xf32>
    %100 = arith.subf %94, %99 : vector<8x32xf32>
    %101 = arith.mulf %100, %100 : vector<8x32xf32>
    %cst_40 = arith.constant dense<0.000000e+00> : vector<8xf32>
    %102 = vector.multi_reduction <add>, %101, %cst_40 [1] : vector<8x32xf32> to vector<8xf32>
    %103 = vector.shape_cast %102 : vector<8xf32> to vector<8x1xf32>
    %cst_41 = arith.constant 3.200000e+01 : f32
    %104 = vector.broadcast %cst_41 : f32 to vector<8x1xf32>
    %105 = arith.divf %103, %104 : vector<8x1xf32>
    %cst_42 = arith.constant 9.99999974E-6 : f32
    %106 = vector.broadcast %cst_42 : f32 to vector<8x1xf32>
    %107 = arith.addf %105, %106 : vector<8x1xf32>
    %108 = math.rsqrt %107 : vector<8x1xf32>
    %109 = vector.broadcast %108 : vector<8x1xf32> to vector<8x32xf32>
    %110 = arith.mulf %100, %109 : vector<8x32xf32>
    %111 = vector.broadcast %4 : vector<1x32xf32> to vector<8x32xf32>
    %112 = arith.mulf %110, %111 : vector<8x32xf32>
    %113 = vector.broadcast %5 : vector<1x32xf32> to vector<8x32xf32>
    %114 = arith.addf %112, %113 : vector<8x32xf32>
    %cst_43 = arith.constant 0.000000e+00 : f32
    %115 = vector.broadcast %cst_43 : f32 to vector<8x32xf32>
    %116 = arith.maximumf %114, %115 : vector<8x32xf32>
    %c8_44 = arith.constant 8 : index
    %c0_45 = arith.constant 0 : index
    %117 = vector.load %arg1[%c8_44, %c0_45] : memref<16x32xf32, #tpu.memory_space<vmem>>, vector<8x32xf32>
    %118 = arith.addf %116, %117 : vector<8x32xf32>
    %c8_46 = arith.constant 8 : index
    %c0_47 = arith.constant 0 : index
    %119 = vector.load %arg5[%c8_46, %c0_47] : memref<16x32xf32, #tpu.memory_space<vmem>>, vector<8x32xf32>
    tpu.vector_store %arg5[%c8_46, %c0_47], %118 {strides = array<i32>} : memref<16x32xf32, #tpu.memory_space<vmem>>, vector<8x32xf32>,
    return
  }
  func.func @transform_0(%arg0: i32) -> (i32, i32) {
    %c0_i32 = arith.constant 0 : i32
    %c0_i32_0 = arith.constant 0 : i32
    return %arg0, %c0_i32 : i32, i32
  }
  func.func @transform_1(%arg0: i32) -> (i32, i32) {
    %c0_i32 = arith.constant 0 : i32
    %c0_i32_0 = arith.constant 0 : i32
    %c0_i32_1 = arith.constant 0 : i32
    return %c0_i32, %c0_i32_0 : i32, i32
  }
  func.func @transform_2(%arg0: i32) -> (i32, i32) {
    %c0_i32 = arith.constant 0 : i32
    %c0_i32_0 = arith.constant 0 : i32
    %c0_i32_1 = arith.constant 0 : i32
    return %c0_i32, %c0_i32_0 : i32, i32
  }
  func.func @transform_3(%arg0: i32) -> (i32, i32) {
    %c0_i32 = arith.constant 0 : i32
    %c0_i32_0 = arith.constant 0 : i32
    %c0_i32_1 = arith.constant 0 : i32
    return %c0_i32, %c0_i32_0 : i32, i32
  }
  func.func @transform_4(%arg0: i32) -> (i32, i32) {
    %c0_i32 = arith.constant 0 : i32
    %c0_i32_0 = arith.constant 0 : i32
    return %arg0, %c0_i32 : i32, i32
  }
}

</mosaic_0001>

<bundles_post_ra>
// kernel: res_layer.1
= control target key start
LH: loop header
LB: loop body
LE: loop exit
PB: predicated region body
PF: predicated region fallthrough
CT: control target
= control target key end

     0   :  { %9 = vsyncpa [#allocation3], 0  ;;  %s481_s0 = inlined_call_operand.vmem [shape: f32[16,32], index: 0, kind: input, shape index: {}]   ;;  %s482_s1 = inlined_call_operand.vmem [shape: bf16[32,32], index: 1, kind: input, shape index: {}]   ;;  %s483_s2 = inlined_call_operand.hbm [shape: bf16[32,32], index: 2, kind: input, shape index: {}]   ;;  %s484_s3 = inlined_call_operand.vmem [shape: f32[8,32], index: 3, kind: input, shape index: {}]   ;;  %s485_s4 = inlined_call_operand.hbm [shape: f32[16,32], index: 4, kind: output, shape index: {}]  }
   0x1   :  { %10 = vsyncpa [#allocation4], 0  ;;  %s19_s17 = sshll.u32 %s483_s2, 4  ;;  %s379_s18 = smov [#allocation2]   ;;  %s20_s17 = int_to_ptr.hbm [resolvable:$true] %s19_s17 }
   0x2   :  { %s21_s19 = sshll.u32 %s379_s18, 4  ;;  %s380_s20 = smov 64   ;;  %s22_s19 = int_to_ptr.vmem [resolvable:$true] %s21_s19 }
   0x3   :  { %s381_s21 = smov 4  }
   0x4   :  { %27 = dma.hbm_to_vmem [thread:$0]  %s20_s17, 256, %s22_s19, [#allocation3], %s380_s20, %s380_s20, %s381_s21  }
   0x5   :  { %375 = dma.done.wait [#allocation3], 256  }
   0x6   :  { %376 = vsyncadd [#allocation3], 4294967040  ;;  %v301_v0 = vld [vmem:[%s482_s1 + $0x8] sm:$0xff]  ;;  %v300_v1 = vld [vmem:[%s482_s1] sm:$0xff]  ;;  %vm64_vm0 = vcmask 261120   ;;  %v382_v15 = vmov 32.0  }
   0x7   :  { %v423_v2 = vld [vmem:[%s481_s0 + $0x8] sm:$0xff]  ;;  %v428_v3 = vld [vmem:[%s481_s0] sm:$0xff]  ;;  %185 = vmatpush.bf16.msra.mxu2 %v301_v0  ;;  %74 = vmatpush.bf16.msra.mxu0 %v301_v0  ;;  %317 = vrcp.f32 %v382_v15  ;;  %s383_s13 = smov [#allocation5]   ;;  %s267_s16 = sshll.u32 %s485_s4, 4  ;;  %s268_s16 = int_to_ptr.hbm [resolvable:$true] %s267_s16 }
   0x8   :  { %v175_v4 = vpack.c.bf16 %v423_v2, %v423_v2  ;;  %v50_v5 = vpack.c.bf16 %v428_v3, %v428_v3  ;;  %v311_v7 = vld [vmem:[%s484_s3] ss:$0 sm:$0xff]  ;;  %v303_v32 = vld [vmem:[#allocation2 + $0x8] sm:$0xff]  ;;  %v312_v48 = vld [vmem:[%s484_s3 + $0x1] ss:$0 sm:$0xff]  ;;  %s384_s17 = smov 128  }
   0x9   :  { %227 = vmatpush.bf16.msra.mxu3 %v303_v32  ;;  %138 = vmatpush.bf16.msra.mxu1 %v303_v32  ;;  %v302_v33 = vld [vmem:[#allocation2] sm:$0xff]  ;;  %s385_s18 = smov 8  }
   0xa   :  { %v313_v51 = vld [vmem:[%s484_s3 + $0x2] ss:$0 sm:$0xff] }
   0xb   :  { %186 = vmatpush.bf16.msra.mxu2 %v300_v1  ;;  %75 = vmatpush.bf16.msra.mxu0 %v300_v1 }
   0xd   :  { %v318_v16 = vpop.eup %317  ;;  %228 = vmatpush.bf16.msra.mxu3 %v302_v33  ;;  %139 = vmatpush.bf16.msra.mxu1 %v302_v33 }
   0xe   :  { %298 = vmatmul.msk.bf16.vlgmr.msra.gmra.mxu2 %vm64_vm0, %v175_v4  ;;  %288 = vmatmul.msk.bf16.vlgmr.msra.gmra.mxu0 %vm64_vm0, %v50_v5  ;;  %v85_v17 = vmul.f32 32.0, %v318_v16  ;;  %vm89_vm1 = vweird.f32 %v318_v16  ;;  %v314_v5 = vld [vmem:[%s484_s3 + $0x3] ss:$0 sm:$0xff] }
  0x10   :  { %v86_v18 = vsub.f32 1.0, %v85_v17 }
  0x12   :  { %v87_v19 = vmul.f32 %v318_v16, %v86_v18 }
  0x14   :  { %v88_v20 = vadd.f32 %v318_v16, %v87_v19 }
  0x16   :  { %v441_v21 = vsel %vm89_vm1, %v318_v16, %v88_v20 }
  0x8b   :  { %v77_v6 = vpop.f32.mrf.mxu0 }
  0x8c   :  { %v78_v12 = vadd.f32 %v311_v7, %v77_v6 }
  0x8e   :  { %v81_v14 = vsel %vm64_vm0, %v78_v12, 0.0 }
  0x91   :  { %v188_v8 = vpop.f32.mrf.mxu2 }
  0x92   :  { %v189_v9 = vadd.f32 %v311_v7, %v188_v8 }
  0x93   :  { %v79_v10 = vpop.f32.mrf.mxu0 }
  0x94   :  { %v192_v11 = vsel %vm64_vm0, %v189_v9, 0.0 }
  0x95   :  { %193 = vadd.xlane.f32.xlu0 %v192_v11 }
  0x99   :  { %v190_v13 = vpop.f32.mrf.mxu2 }
  0x9d   :  { %82 = vadd.xlane.f32.xlu0 %v81_v14 }
 0x108   :  { %v194_v22 = vpop.xlane.xlu0 %193 }
 0x109   :  { %v195_v23 = vmul.f32 %v194_v22, %v441_v21 }
 0x10b   :  { %v196_v24 = vsub.f32 %v189_v9, %v195_v23 }
 0x10d   :  { %v197_v25 = vmul.f32 %v196_v24, %v196_v24 }
 0x10f   :  { %v198_v26 = vsel %vm64_vm0, %v197_v25, 0.0 }
 0x110   :  { %199 = vadd.xlane.f32.xlu1 %v198_v26  ;;  %v83_v27 = vpop.xlane.xlu0 %82 }
 0x111   :  { %v91_v28 = vmul.f32 %v441_v21, %v83_v27 }
 0x113   :  { %v92_v29 = vsub.f32 %v78_v12, %v91_v28 }
 0x115   :  { %v93_v30 = vmul.f32 %v92_v29, %v92_v29 }
 0x117   :  { %v94_v31 = vsel %vm64_vm0, %v93_v30, 0.0 }
 0x118   :  { %95 = vadd.xlane.f32.xlu1 %v94_v31 }
 0x183   :  { %v200_v34 = vpop.xlane.xlu1 %199 }
 0x184   :  { %v201_v35 = vmul.f32 %v200_v34, %v441_v21 }
 0x186   :  { %v202_v36 = vadd.f32 1e-05, %v201_v35 }
 0x188   :  { %319 = vrsqrt.f32 %v202_v36  ;;  %vm209_vm3 = vweird.f32 %v202_v36 }
 0x18b   :  { %v96_v37 = vpop.xlane.xlu1 %95 }
 0x18c   :  { %v97_v38 = vmul.f32 %v96_v37, %v441_v21 }
 0x18e   :  { %v320_v39 = vpop.eup %319  ;;  %v98_v40 = vadd.f32 1e-05, %v97_v38  ;;  %v315_v38 = vld [vmem:[%s484_s3 + $0x4] ss:$0 sm:$0xff] }
 0x18f   :  { %v204_v41 = vmul.f32 %v320_v39, %v202_v36  ;;  %vm210_vm2 = vweird.f32 %v320_v39 }
 0x190   :  { %321 = vrsqrt.f32 %v98_v40  ;;  %vm211_vm4 = vmor %vm209_vm3, %vm210_vm2  ;;  %vm105_vm6 = vweird.f32 %v98_v40 }
 0x191   :  { %v205_v42 = vmul.f32 %v320_v39, %v204_v41 }
 0x193   :  { %v206_v43 = vmul.f32 0.5, %v205_v42 }
 0x195   :  { %v207_v44 = vsub.f32 1.5, %v206_v43 }
 0x196   :  { %v322_v45 = vpop.eup %321 }
 0x197   :  { %v208_v46 = vmul.f32 %v320_v39, %v207_v44  ;;  %v100_v47 = vmul.f32 %v322_v45, %v98_v40  ;;  %vm106_vm5 = vweird.f32 %v322_v45 }
 0x198   :  { %vm107_vm7 = vmor %vm105_vm6, %vm106_vm5 }
 0x199   :  { %v212_v49 = vsel %vm211_vm4, %v320_v39, %v208_v46  ;;  %v101_v50 = vmul.f32 %v322_v45, %v100_v47 }
 0x19a   :  { %v213_v52 = vmul.f32 %v212_v49, %v196_v24 }
 0x19b   :  { %v102_v53 = vmul.f32 0.5, %v101_v50 }
 0x19c   :  { %v214_v54 = vmul.f32 %v312_v48, %v213_v52 }
 0x19d   :  { %v103_v55 = vsub.f32 1.5, %v102_v53 }
 0x19e   :  { %v215_v56 = vadd.f32 %v313_v51, %v214_v54 }
 0x19f   :  { %v104_v57 = vmul.f32 %v322_v45, %v103_v55 }
 0x1a0   :  { %v216_v58 = vmax.f32 %v215_v56, 0.0 }
 0x1a1   :  { %v108_v59 = vsel %vm107_vm7, %v322_v45, %v104_v57 }
 0x1a2   :  { %v217_v60 = vpack.c.bf16 %v216_v58, %v216_v58  ;;  %v109_v61 = vmul.f32 %v108_v59, %v92_v29 }
 0x1a4   :  { %299 = vmatmul.msk.bf16.vlgmr.msra.gmra.mxu3 %vm64_vm0, %v217_v60  ;;  %v111_v62 = vmul.f32 %v312_v48, %v109_v61 }
 0x1a6   :  { %v113_v63 = vadd.f32 %v313_v51, %v111_v62 }
 0x1a8   :  { %v114_v0 = vmax.f32 %v113_v63, 0.0 }
 0x1aa   :  { %v115_v1 = vpack.c.bf16 %v114_v0, %v114_v0 }
 0x1ac   :  { %297 = vmatmul.msk.bf16.vlgmr.msra.gmra.mxu1 %vm64_vm0, %v115_v1 }
 0x227   :  { %v230_v4 = vpop.f32.mrf.mxu3 }
 0x228   :  { %v231_v10 = vadd.f32 %v314_v5, %v230_v4 }
 0x229   :  { %v141_v6 = vpop.f32.mrf.mxu1 }
 0x22a   :  { %v142_v7 = vadd.f32 %v314_v5, %v141_v6  ;;  %v234_v12 = vsel %vm64_vm0, %v231_v10, 0.0 }
 0x22c   :  { %v145_v8 = vsel %vm64_vm0, %v142_v7, 0.0 }
 0x22d   :  { %146 = vadd.xlane.f32.xlu2 %v145_v8 }
 0x22f   :  { %v232_v9 = vpop.f32.mrf.mxu3 }
 0x231   :  { %v143_v11 = vpop.f32.mrf.mxu1 }
 0x235   :  { %235 = vadd.xlane.f32.xlu2 %v234_v12 }
 0x2a0   :  { %v147_v13 = vpop.xlane.xlu2 %146 }
 0x2a1   :  { %v148_v14 = vmul.f32 %v147_v13, %v441_v21 }
 0x2a3   :  { %v149_v15 = vsub.f32 %v142_v7, %v148_v14 }
 0x2a5   :  { %v150_v16 = vmul.f32 %v149_v15, %v149_v15 }
 0x2a7   :  { %v151_v17 = vsel %vm64_vm0, %v150_v16, 0.0 }
 0x2a8   :  { %152 = vadd.xlane.f32.xlu0 %v151_v17  ;;  %v236_v18 = vpop.xlane.xlu2 %235 }
 0x2a9   :  { %v237_v19 = vmul.f32 %v236_v18, %v441_v21 }
 0x2ab   :  { %v238_v20 = vsub.f32 %v231_v10, %v237_v19 }
 0x2ad   :  { %v239_v22 = vmul.f32 %v238_v20, %v238_v20 }
 0x2af   :  { %v240_v23 = vsel %vm64_vm0, %v239_v22, 0.0 }
 0x2b0   :  { %241 = vadd.xlane.f32.xlu1 %v240_v23 }
 0x31b   :  { %v153_v24 = vpop.xlane.xlu0 %152 }
 0x31c   :  { %v154_v25 = vmul.f32 %v153_v24, %v441_v21 }
 0x31e   :  { %v155_v26 = vadd.f32 1e-05, %v154_v25 }
 0x320   :  { %323 = vrsqrt.f32 %v155_v26  ;;  %vm162_vm9 = vweird.f32 %v155_v26 }
 0x323   :  { %v242_v27 = vpop.xlane.xlu1 %241 }
 0x324   :  { %v243_v28 = vmul.f32 %v242_v27, %v441_v21  ;;  %v316_v21 = vld [vmem:[%s484_s3 + $0x5] ss:$0 sm:$0xff]  ;;  %s265_s3 = sshll.u32 %s383_s13, 4  ;;  %s266_s3 = int_to_ptr.vmem [resolvable:$true] %s265_s3 }
 0x326   :  { %v324_v29 = vpop.eup %323  ;;  %v244_v30 = vadd.f32 1e-05, %v243_v28 }
 0x327   :  { %v157_v31 = vmul.f32 %v324_v29, %v155_v26  ;;  %vm163_vm8 = vweird.f32 %v324_v29 }
 0x328   :  { %325 = vrsqrt.f32 %v244_v30  ;;  %vm164_vm10 = vmor %vm162_vm9, %vm163_vm8  ;;  %vm251_vm12 = vweird.f32 %v244_v30 }
 0x329   :  { %v158_v32 = vmul.f32 %v324_v29, %v157_v31 }
 0x32b   :  { %v159_v33 = vmul.f32 0.5, %v158_v32 }
 0x32d   :  { %v160_v34 = vsub.f32 1.5, %v159_v33 }
 0x32e   :  { %v326_v35 = vpop.eup %325 }
 0x32f   :  { %v161_v36 = vmul.f32 %v324_v29, %v160_v34  ;;  %v246_v37 = vmul.f32 %v326_v35, %v244_v30  ;;  %vm252_vm11 = vweird.f32 %v326_v35 }
 0x330   :  { %vm253_vm13 = vmor %vm251_vm12, %vm252_vm11 }
 0x331   :  { %v165_v39 = vsel %vm164_vm10, %v324_v29, %v161_v36  ;;  %v247_v40 = vmul.f32 %v326_v35, %v246_v37 }
 0x332   :  { %v166_v41 = vmul.f32 %v165_v39, %v149_v15 }
 0x333   :  { %v248_v42 = vmul.f32 0.5, %v247_v40 }
 0x334   :  { %v168_v43 = vmul.f32 %v315_v38, %v166_v41 }
 0x335   :  { %v249_v44 = vsub.f32 1.5, %v248_v42 }
 0x336   :  { %v170_v45 = vadd.f32 %v316_v21, %v168_v43 }
 0x337   :  { %v250_v46 = vmul.f32 %v326_v35, %v249_v44 }
 0x338   :  { %v171_v47 = vmax.f32 %v170_v45, 0.0 }
 0x339   :  { %v254_v48 = vsel %vm253_vm13, %v326_v35, %v250_v46 }
 0x33a   :  { %v255_v49 = vmul.f32 %v254_v48, %v238_v20  ;;  %v172_v50 = vadd.f32 %v171_v47, %v428_v3 }
 0x33c   :  { %v256_v51 = vmul.f32 %v315_v38, %v255_v49  ;;  %173 = vst.msk [vmem:[#allocation5] sm:$0xff] %vm64_vm0, %v172_v50 }
 0x33e   :  { %v257_v52 = vadd.f32 %v316_v21, %v256_v51 }
 0x340   :  { %v258_v53 = vmax.f32 %v257_v52, 0.0 }
 0x342   :  { %v259_v54 = vadd.f32 %v258_v53, %v423_v2 }
 0x344   :  { %260 = vst.msk [vmem:[#allocation5 + $0x8] sm:$0xff] %vm64_vm0, %v259_v54 }
 0x345   :  { %273 = dma.vmem_to_hbm [thread:$0]  %s266_s3, 256, %s268_s16, [#allocation4], %s384_s17, %s384_s17, %s385_s18  }
 0x346   :  { %377 = dma.done.wait [#allocation4], 256  }
 0x347   :  { %378 = vsyncadd [#allocation4], 4294967040 }
 0x348   :  { %278 = vsyncpa [#allocation3], 1 }
 0x349   :  { %279 = vsyncpa [#allocation4], 1 }

</bundles_post_ra>
